<compile_context>
chip_gen: v7x
topology: tpu7x:2x2x1
jax: 0.10.0
libtpu: 0.0.40
codegen_flags: <defaults>
</compile_context>

<pallas_src>
import functools

import jax
import jax.numpy as jnp
from jax.experimental import pallas as pl
from jax.experimental.pallas import tpu as pltpu


def unet_block_kernel(x_ref, w1_ref, b1_ref, w2_ref, b2_ref, g_ref, bt_ref,
                      t_ref, o_ref, *, N, H, W, Cout):
    # x_ref  : (N, H+2, W*Cin)      bf16  lane-dense input, padded along H only
    # w1_ref : (3, W*Cin,  W*Cout)  bf16  banded conv1 weights (one per ky tap)
    # w2_ref : (3, W*Cout, W*Cout)  bf16  banded conv2 weights
    # b1/b2/g/bt refs : (1, W*Cout) f32   per-channel params tiled across W
    # t_ref  : (W*Cout, W*Cout)     f32   tiled identity: per-channel reduce+bcast
    # o_ref  : (N*H, W*Cout)        f32   lane-dense output
    R = N * H
    C1 = x_ref.shape[-1]
    C2 = W * Cout
    eps = 1e-5
    inv_m = 1.0 / (N * H * W)
    f32 = jnp.float32

    # ---- conv1: 3 banded matmuls (one per vertical tap) + bias + ReLU ------
    xp = x_ref[...]                                       # (N, H+2, W*Cin)
    acc = jnp.dot(xp[:, 0:H, :].reshape(R, C1), w1_ref[0],
                  preferred_element_type=f32)
    acc += jnp.dot(xp[:, 1:H + 1, :].reshape(R, C1), w1_ref[1],
                   preferred_element_type=f32)
    acc += jnp.dot(xp[:, 2:H + 2, :].reshape(R, C1), w1_ref[2],
                   preferred_element_type=f32)
    h1 = jnp.maximum(acc + b1_ref[...], 0.0)              # (R, W*Cout) f32

    # ---- conv2: vertical taps built from h1 while live (no scratch) --------
    h1b = h1.astype(jnp.bfloat16)                         # (R, C2) bf16
    h1b3 = h1b.reshape(N, H, C2)
    zrow = jnp.zeros((N, 1, C2), jnp.bfloat16)
    # output row y reads rows y-1 / y / y+1, zero-padded at each image's edges
    dn = jnp.concatenate([zrow, h1b3[:, :H - 1, :]], axis=1).reshape(R, C2)
    up = jnp.concatenate([h1b3[:, 1:, :], zrow], axis=1).reshape(R, C2)
    acc2 = jnp.dot(dn, w2_ref[0], preferred_element_type=f32)
    acc2 += jnp.dot(h1b, w2_ref[1], preferred_element_type=f32)
    acc2 += jnp.dot(up, w2_ref[2], preferred_element_type=f32)
    y = acc2 + b2_ref[...]                                # (R, C2) f32

    # ---- BatchNorm2d (training-mode batch stats) + ReLU, lane-dense --------
    # MXU reductions: ones(1,R) @ y sums over rows; @ T sums over the W lane
    # groups and re-broadcasts the per-channel value across every lane.
    ones_r = jnp.ones((1, R), f32)
    tmat = t_ref[...]
    mean = jnp.dot(jnp.dot(ones_r, y, preferred_element_type=f32), tmat,
                   preferred_element_type=f32) * inv_m    # (1, C2), tiled
    d = y - mean
    var = jnp.dot(jnp.dot(ones_r, d * d, preferred_element_type=f32), tmat,
                  preferred_element_type=f32) * inv_m     # biased variance
    scale = g_ref[...] * jax.lax.rsqrt(var + eps)
    o_ref[...] = jnp.maximum(d * scale + bt_ref[...], 0.0)


def _banded_weights(w, cin, W, Cout):
    """w: (3, 3, cin, Cout) HWIO -> (3, W*cin, W*Cout) banded matrices.

    out[ky, x'*cin + ci, x*Cout + co] = w[ky, x'-x+1, ci, co] inside the band,
    0 outside — i.e. horizontal taps and horizontal zero padding are folded
    into the weights; only the vertical taps stay explicit.
    """
    xs = jnp.arange(W)
    band = (xs[None, :, None] ==
            xs[None, None, :] + jnp.arange(3)[:, None, None] - 1)
    band = band.astype(w.dtype)                            # (kx, x', x)
    wb = jnp.einsum('kpx,gkio->gpixo', band, w)            # (ky, x', ci, x, co)
    return wb.reshape(3, W * cin, W * Cout).astype(jnp.bfloat16)


def unet_block(x_nchw, w1, b1, w2, b2, gamma, beta):
    """Unet_block forward. x_nchw: (N, Cin, H, W) -> (N, Cout, H, W).

    Conv weights are HWIO: w1 (3,3,Cin,Cout), w2 (3,3,Cout,Cout).
    """
    N, Cin, H, W = x_nchw.shape
    Cout = w1.shape[-1]
    C2 = W * Cout

    # Lane-dense input slab (W folded into lanes), padded only along H.
    x_ld = jnp.transpose(x_nchw, (0, 2, 3, 1)).reshape(N, H, W * Cin)
    xp = jnp.pad(x_ld, ((0, 0), (1, 1), (0, 0))).astype(jnp.bfloat16)

    w1b = _banded_weights(w1.astype(jnp.float32), Cin, W, Cout)
    w2b = _banded_weights(w2.astype(jnp.float32), Cout, W, Cout)

    def tile_lanes(p):  # (Cout,) -> (1, W*Cout) matching lane index x*Cout+co
        return jnp.tile(p.astype(jnp.float32), W).reshape(1, C2)

    # Tiled identity: T[x'*Cout+ci, x*Cout+co] = (ci == co).
    tmat = jnp.tile(jnp.eye(Cout, dtype=jnp.float32), (W, W))

    vmem = pl.BlockSpec(memory_space=pltpu.MemorySpace.VMEM)
    kern = functools.partial(unet_block_kernel, N=N, H=H, W=W, Cout=Cout)
    out2d = pl.pallas_call(
        kern,
        out_shape=jax.ShapeDtypeStruct((N * H, C2), jnp.float32),
        in_specs=[vmem] * 8,
        out_specs=vmem,
        compiler_params=pltpu.CompilerParams(
            vmem_limit_bytes=64 * 1024 * 1024),
    )(xp, w1b, tile_lanes(b1), w2b, tile_lanes(b2),
      tile_lanes(gamma), tile_lanes(beta), tmat)

    out_nhwc = out2d.reshape(N, H, W, Cout)
    return jnp.transpose(out_nhwc, (0, 3, 1, 2))           # back to NCHW


def reference_forward(x_nchw, w1, b1, w2, b2, gamma, beta):
    """Plain-JAX f32 reference matching PyTorch training-mode semantics."""
    dn = ("NCHW", "HWIO", "NCHW")
    h = jax.lax.conv_general_dilated(x_nchw, w1, (1, 1), ((1, 1), (1, 1)),
                                     dimension_numbers=dn)
    h = jnp.maximum(h + b1[None, :, None, None], 0.0)
    y = jax.lax.conv_general_dilated(h, w2, (1, 1), ((1, 1), (1, 1)),
                                     dimension_numbers=dn)
    y = y + b2[None, :, None, None]
    mean = jnp.mean(y, axis=(0, 2, 3), keepdims=True)
    var = jnp.mean((y - mean) ** 2, axis=(0, 2, 3), keepdims=True)
    yn = (y - mean) * jax.lax.rsqrt(var + 1e-5)
    return jnp.maximum(yn * gamma[None, :, None, None]
                       + beta[None, :, None, None], 0.0)


if __name__ == "__main__":
    # Small shapes consistent with the module: NCHW input, 4 -> 8 channels.
    N, Cin, Cout, H, W = 2, 4, 8, 16, 16

    key = jax.random.PRNGKey(0)
    kx, kw1, kb1, kw2, kb2, kg, kb = jax.random.split(key, 7)

    x = jax.random.normal(kx, (N, Cin, H, W), jnp.float32)
    # Deterministic synthetic parameters (HWIO layout for conv weights).
    w1 = jax.random.normal(kw1, (3, 3, Cin, Cout), jnp.float32) * 0.1
    b1 = jax.random.normal(kb1, (Cout,), jnp.float32) * 0.1
    w2 = jax.random.normal(kw2, (3, 3, Cout, Cout), jnp.float32) * 0.1
    b2 = jax.random.normal(kb2, (Cout,), jnp.float32) * 0.1
    gamma = 1.0 + 0.1 * jax.random.normal(kg, (Cout,), jnp.float32)
    beta = 0.1 * jax.random.normal(kb, (Cout,), jnp.float32)

    out = unet_block(x, w1, b1, w2, b2, gamma, beta)
    out = jax.block_until_ready(out)

    ref = reference_forward(x, w1, b1, w2, b2, gamma, beta)
    assert out.shape == (N, Cout, H, W), out.shape
    # bf16 MXU operands (f32 accumulation / f32 BN stats) -> looser tolerance
    # than a pure-f32 path; semantic errors would be O(1).
    max_err = float(jnp.max(jnp.abs(out - ref)))
    assert jnp.allclose(out, ref, atol=3e-2, rtol=3e-2), max_err

    print("KERNEL_OK")
</pallas_src>

<mosaic_0001>
module attributes {stable_mosaic.version = 11 : i64} {
  func.func @unet_block_kernel(%arg0: memref<2x18x64xbf16, #tpu.memory_space<vmem>>, %arg1: memref<3x64x128xbf16, #tpu.memory_space<vmem>>, %arg2: memref<1x128xf32, #tpu.memory_space<vmem>>, %arg3: memref<3x128x128xbf16, #tpu.memory_space<vmem>>, %arg4: memref<1x128xf32, #tpu.memory_space<vmem>>, %arg5: memref<1x128xf32, #tpu.memory_space<vmem>>, %arg6: memref<1x128xf32, #tpu.memory_space<vmem>>, %arg7: memref<128x128xf32, #tpu.memory_space<vmem>>, %arg8: memref<32x128xf32, #tpu.memory_space<vmem>>) attributes {dimension_semantics = [], scalar_prefetch = 0 : i64, scratch_operands = 0 : i64, tpu.core_type = #tpu.core_type<tc>} {
    %c0 = arith.constant 0 : index
    %c0_0 = arith.constant 0 : index
    %c0_1 = arith.constant 0 : index
    %0 = vector.load %arg0[%c0, %c0_0, %c0_1] : memref<2x18x64xbf16, #tpu.memory_space<vmem>>, vector<2x18x64xbf16>
    %1 = vector.extract_strided_slice %0 {offsets = [0, 0, 0], sizes = [2, 16, 64], strides = [1, 1, 1]} : vector<2x18x64xbf16> to vector<2x16x64xbf16>
    %2 = vector.shape_cast %1 : vector<2x16x64xbf16> to vector<32x64xbf16>
    %c0_2 = arith.constant 0 : index
    %c0_3 = arith.constant 0 : index
    %c0_4 = arith.constant 0 : index
    %3 = vector.load %arg1[%c0_2, %c0_3, %c0_4] : memref<3x64x128xbf16, #tpu.memory_space<vmem>>, vector<1x64x128xbf16>
    %4 = vector.shape_cast %3 : vector<1x64x128xbf16> to vector<64x128xbf16>
    %cst = arith.constant dense<0.000000e+00> : vector<32x128xf32>
    %5 = tpu.matmul %2, %4, %cst {dimension_numbers = #tpu.dot_dimension_numbers<[1], [0], [0], [1], [0, 0, 1, 1], [], []>} : vector<32x64xbf16>, vector<64x128xbf16>, vector<32x128xf32> -> vector<32x128xf32>
    %6 = vector.extract_strided_slice %0 {offsets = [0, 1, 0], sizes = [2, 16, 64], strides = [1, 1, 1]} : vector<2x18x64xbf16> to vector<2x16x64xbf16>
    %7 = vector.shape_cast %6 : vector<2x16x64xbf16> to vector<32x64xbf16>
    %c1 = arith.constant 1 : index
    %c0_5 = arith.constant 0 : index
    %c0_6 = arith.constant 0 : index
    %8 = vector.load %arg1[%c1, %c0_5, %c0_6] : memref<3x64x128xbf16, #tpu.memory_space<vmem>>, vector<1x64x128xbf16>
    %9 = vector.shape_cast %8 : vector<1x64x128xbf16> to vector<64x128xbf16>
    %cst_7 = arith.constant dense<0.000000e+00> : vector<32x128xf32>
    %10 = tpu.matmul %7, %9, %cst_7 {dimension_numbers = #tpu.dot_dimension_numbers<[1], [0], [0], [1], [0, 0, 1, 1], [], []>} : vector<32x64xbf16>, vector<64x128xbf16>, vector<32x128xf32> -> vector<32x128xf32>
    %11 = arith.addf %5, %10 : vector<32x128xf32>
    %12 = vector.extract_strided_slice %0 {offsets = [0, 2, 0], sizes = [2, 16, 64], strides = [1, 1, 1]} : vector<2x18x64xbf16> to vector<2x16x64xbf16>
    %13 = vector.shape_cast %12 : vector<2x16x64xbf16> to vector<32x64xbf16>
    %c2 = arith.constant 2 : index
    %c0_8 = arith.constant 0 : index
    %c0_9 = arith.constant 0 : index
    %14 = vector.load %arg1[%c2, %c0_8, %c0_9] : memref<3x64x128xbf16, #tpu.memory_space<vmem>>, vector<1x64x128xbf16>
    %15 = vector.shape_cast %14 : vector<1x64x128xbf16> to vector<64x128xbf16>
    %cst_10 = arith.constant dense<0.000000e+00> : vector<32x128xf32>
    %16 = tpu.matmul %13, %15, %cst_10 {dimension_numbers = #tpu.dot_dimension_numbers<[1], [0], [0], [1], [0, 0, 1, 1], [], []>} : vector<32x64xbf16>, vector<64x128xbf16>, vector<32x128xf32> -> vector<32x128xf32>
    %17 = arith.addf %11, %16 : vector<32x128xf32>
    %c0_11 = arith.constant 0 : index
    %c0_12 = arith.constant 0 : index
    %18 = vector.load %arg2[%c0_11, %c0_12] : memref<1x128xf32, #tpu.memory_space<vmem>>, vector<1x128xf32>
    %19 = vector.broadcast %18 : vector<1x128xf32> to vector<32x128xf32>
    %20 = arith.addf %17, %19 : vector<32x128xf32>
    %cst_13 = arith.constant 0.000000e+00 : f32
    %21 = vector.broadcast %cst_13 : f32 to vector<32x128xf32>
    %22 = arith.maximumf %20, %21 : vector<32x128xf32>
    %23 = arith.truncf %22 : vector<32x128xf32> to vector<32x128xbf16>
    %24 = vector.shape_cast %23 : vector<32x128xbf16> to vector<2x16x128xbf16>
    %cst_14 = arith.constant 0.000000e+00 : bf16
    %25 = vector.broadcast %cst_14 : bf16 to vector<2x1x128xbf16>
    %26 = vector.extract_strided_slice %24 {offsets = [0, 0, 0], sizes = [2, 15, 128], strides = [1, 1, 1]} : vector<2x16x128xbf16> to vector<2x15x128xbf16>
    %27 = tpu.concatenate %25, %26 in 1 : vector<2x1x128xbf16>, vector<2x15x128xbf16> -> vector<2x16x128xbf16>
    %28 = vector.shape_cast %27 : vector<2x16x128xbf16> to vector<32x128xbf16>
    %29 = vector.extract_strided_slice %24 {offsets = [0, 1, 0], sizes = [2, 15, 128], strides = [1, 1, 1]} : vector<2x16x128xbf16> to vector<2x15x128xbf16>
    %30 = tpu.concatenate %29, %25 in 1 : vector<2x15x128xbf16>, vector<2x1x128xbf16> -> vector<2x16x128xbf16>
    %31 = vector.shape_cast %30 : vector<2x16x128xbf16> to vector<32x128xbf16>
    %c0_15 = arith.constant 0 : index
    %c0_16 = arith.constant 0 : index
    %c0_17 = arith.constant 0 : index
    %32 = vector.load %arg3[%c0_15, %c0_16, %c0_17] : memref<3x128x128xbf16, #tpu.memory_space<vmem>>, vector<1x128x128xbf16>
    %33 = vector.shape_cast %32 : vector<1x128x128xbf16> to vector<128x128xbf16>
    %cst_18 = arith.constant dense<0.000000e+00> : vector<32x128xf32>
    %34 = tpu.matmul %28, %33, %cst_18 {dimension_numbers = #tpu.dot_dimension_numbers<[1], [0], [0], [1], [0, 0, 1, 1], [], []>} : vector<32x128xbf16>, vector<128x128xbf16>, vector<32x128xf32> -> vector<32x128xf32>
    %c1_19 = arith.constant 1 : index
    %c0_20 = arith.constant 0 : index
    %c0_21 = arith.constant 0 : index
    %35 = vector.load %arg3[%c1_19, %c0_20, %c0_21] : memref<3x128x128xbf16, #tpu.memory_space<vmem>>, vector<1x128x128xbf16>
    %36 = vector.shape_cast %35 : vector<1x128x128xbf16> to vector<128x128xbf16>
    %cst_22 = arith.constant dense<0.000000e+00> : vector<32x128xf32>
    %37 = tpu.matmul %23, %36, %cst_22 {dimension_numbers = #tpu.dot_dimension_numbers<[1], [0], [0], [1], [0, 0, 1, 1], [], []>} : vector<32x128xbf16>, vector<128x128xbf16>, vector<32x128xf32> -> vector<32x128xf32>
    %38 = arith.addf %34, %37 : vector<32x128xf32>
    %c2_23 = arith.constant 2 : index
    %c0_24 = arith.constant 0 : index
    %c0_25 = arith.constant 0 : index
    %39 = vector.load %arg3[%c2_23, %c0_24, %c0_25] : memref<3x128x128xbf16, #tpu.memory_space<vmem>>, vector<1x128x128xbf16>
    %40 = vector.shape_cast %39 : vector<1x128x128xbf16> to vector<128x128xbf16>
    %cst_26 = arith.constant dense<0.000000e+00> : vector<32x128xf32>
    %41 = tpu.matmul %31, %40, %cst_26 {dimension_numbers = #tpu.dot_dimension_numbers<[1], [0], [0], [1], [0, 0, 1, 1], [], []>} : vector<32x128xbf16>, vector<128x128xbf16>, vector<32x128xf32> -> vector<32x128xf32>
    %42 = arith.addf %38, %41 : vector<32x128xf32>
    %c0_27 = arith.constant 0 : index
    %c0_28 = arith.constant 0 : index
    %43 = vector.load %arg4[%c0_27, %c0_28] : memref<1x128xf32, #tpu.memory_space<vmem>>, vector<1x128xf32>
    %44 = vector.broadcast %43 : vector<1x128xf32> to vector<32x128xf32>
    %45 = arith.addf %42, %44 : vector<32x128xf32>
    %cst_29 = arith.constant 1.000000e+00 : f32
    %46 = vector.broadcast %cst_29 : f32 to vector<1x32xf32>
    %c0_30 = arith.constant 0 : index
    %c0_31 = arith.constant 0 : index
    %47 = vector.load %arg7[%c0_30, %c0_31] : memref<128x128xf32, #tpu.memory_space<vmem>>, vector<128x128xf32>
    %cst_32 = arith.constant dense<0.000000e+00> : vector<1x128xf32>
    %48 = tpu.matmul %46, %45, %cst_32 {dimension_numbers = #tpu.dot_dimension_numbers<[1], [0], [0], [1], [0, 0, 1, 1], [], []>} : vector<1x32xf32>, vector<32x128xf32>, vector<1x128xf32> -> vector<1x128xf32>
    %cst_33 = arith.constant dense<0.000000e+00> : vector<1x128xf32>
    %49 = tpu.matmul %48, %47, %cst_33 {dimension_numbers = #tpu.dot_dimension_numbers<[1], [0], [0], [1], [0, 0, 1, 1], [], []>} : vector<1x128xf32>, vector<128x128xf32>, vector<1x128xf32> -> vector<1x128xf32>
    %cst_34 = arith.constant 0.001953125 : f32
    %50 = vector.broadcast %cst_34 : f32 to vector<1x128xf32>
    %51 = arith.mulf %49, %50 : vector<1x128xf32>
    %52 = vector.broadcast %51 : vector<1x128xf32> to vector<32x128xf32>
    %53 = arith.subf %45, %52 : vector<32x128xf32>
    %54 = arith.mulf %53, %53 : vector<32x128xf32>
    %cst_35 = arith.constant dense<0.000000e+00> : vector<1x128xf32>
    %55 = tpu.matmul %46, %54, %cst_35 {dimension_numbers = #tpu.dot_dimension_numbers<[1], [0], [0], [1], [0, 0, 1, 1], [], []>} : vector<1x32xf32>, vector<32x128xf32>, vector<1x128xf32> -> vector<1x128xf32>
    %cst_36 = arith.constant dense<0.000000e+00> : vector<1x128xf32>
    %56 = tpu.matmul %55, %47, %cst_36 {dimension_numbers = #tpu.dot_dimension_numbers<[1], [0], [0], [1], [0, 0, 1, 1], [], []>} : vector<1x128xf32>, vector<128x128xf32>, vector<1x128xf32> -> vector<1x128xf32>
    %cst_37 = arith.constant 0.001953125 : f32
    %57 = vector.broadcast %cst_37 : f32 to vector<1x128xf32>
    %58 = arith.mulf %56, %57 : vector<1x128xf32>
    %c0_38 = arith.constant 0 : index
    %c0_39 = arith.constant 0 : index
    %59 = vector.load %arg5[%c0_38, %c0_39] : memref<1x128xf32, #tpu.memory_space<vmem>>, vector<1x128xf32>
    %cst_40 = arith.constant 9.99999974E-6 : f32
    %60 = vector.broadcast %cst_40 : f32 to vector<1x128xf32>
    %61 = arith.addf %58, %60 : vector<1x128xf32>
    %62 = math.rsqrt %61 : vector<1x128xf32>
    %63 = arith.mulf %59, %62 : vector<1x128xf32>
    %64 = vector.broadcast %63 : vector<1x128xf32> to vector<32x128xf32>
    %65 = arith.mulf %53, %64 : vector<32x128xf32>
    %c0_41 = arith.constant 0 : index
    %c0_42 = arith.constant 0 : index
    %66 = vector.load %arg6[%c0_41, %c0_42] : memref<1x128xf32, #tpu.memory_space<vmem>>, vector<1x128xf32>
    %67 = vector.broadcast %66 : vector<1x128xf32> to vector<32x128xf32>
    %68 = arith.addf %65, %67 : vector<32x128xf32>
    %cst_43 = arith.constant 0.000000e+00 : f32
    %69 = vector.broadcast %cst_43 : f32 to vector<32x128xf32>
    %70 = arith.maximumf %68, %69 : vector<32x128xf32>
    %c0_44 = arith.constant 0 : index
    %c0_45 = arith.constant 0 : index
    %71 = vector.load %arg8[%c0_44, %c0_45] : memref<32x128xf32, #tpu.memory_space<vmem>>, vector<32x128xf32>
    tpu.vector_store %arg8[%c0_44, %c0_45], %70 {strides = array<i32>} : memref<32x128xf32, #tpu.memory_space<vmem>>, vector<32x128xf32>,
    return
  }
}

</mosaic_0001>

<bundles_post_ra>
// kernel: tpu_custom_call.1
= control target key start
LH: loop header
LB: loop body
LE: loop exit
PB: predicated region body
PF: predicated region fallthrough
CT: control target
= control target key end

     0   :  { %13 = vsyncpa [#allocation3], 0  ;;  %s2280_s0 = inlined_call_operand.hbm [shape: bf16[2,18,64], index: 0, kind: input, shape index: {}]   ;;  %s2281_s1 = inlined_call_operand.hbm [shape: bf16[3,64,128], index: 1, kind: input, shape index: {}]   ;;  %s2282_s2 = inlined_call_operand.hbm [shape: f32[1,128], index: 2, kind: input, shape index: {}]   ;;  %s2283_s3 = inlined_call_operand.hbm [shape: bf16[3,128,128], index: 3, kind: input, shape index: {}]   ;;  %s2284_s4 = inlined_call_operand.hbm [shape: f32[1,128], index: 4, kind: input, shape index: {}]   ;;  %s2285_s5 = inlined_call_operand.hbm [shape: f32[1,128], index: 5, kind: input, shape index: {}]   ;;  %s2286_s6 = inlined_call_operand.hbm [shape: f32[1,128], index: 6, kind: input, shape index: {}]   ;;  %s2287_s7 = inlined_call_operand.hbm [shape: f32[128,128], index: 7, kind: input, shape index: {}]   ;;  %s2288_s8 = inlined_call_operand.hbm [shape: f32[32,128], index: 8, kind: output, shape index: {}]  }
   0x1   :  { %14 = vsyncpa [#allocation6], 0 }
   0x2   :  { %15 = vsyncpa [#allocation9], 0 }
   0x3   :  { %16 = vsyncpa [#allocation12], 0 }
   0x4   :  { %17 = vsyncpa [#allocation15], 0 }
   0x5   :  { %18 = vsyncpa [#allocation4], 0  ;;  %s1949_s27 = smov [#allocation5]   ;;  %s1950_s29 = smov [#allocation8]  }
   0x6   :  { %s36_s28 = sshll.u32 %s1949_s27, 4  ;;  %s58_s30 = sshll.u32 %s1950_s29, 4  ;;  %s37_s28 = int_to_ptr.vmem [resolvable:$true] %s36_s28  ;;  %s2011_s30 = int_to_ptr.vmem [resolvable:$true] %s58_s30 }
   0x7   :  { %s1739_s11 = scalar_lea.hbm %s2281_s1, 1536 }
   0x8   :  { %p1740_p0 = scmp.ne.s32.totalorder %s2281_s1, %s1739_s11  ;;  %p1743_p1 = scmp.lt.u32.totalorder %s1739_s11, %s2281_s1 }
   0xa   :  { %p1745_p2 = pnand %p1743_p1, %p1740_p0 }
   0xc   :  { %1748 = shalt.err (!%p1745_p2)
}
   0xd   :  { %s1749_s16 = scalar_lea.vmem %s37_s28, 1536  ;;  %p1754_p4 = scmp.lt.s32.totalorder %s37_s28, %s37_s28 }
   0xe   :  { %p1750_p3 = scmp.ne.s32.totalorder %s37_s28, %s1749_s16  ;;  %p1755_p5 = scmp.lt.s32.totalorder %s1749_s16, %s1749_s16 }
  0x10   :  { %p1756_p6 = por %p1755_p5, %p1754_p4 }
  0x12   :  { %p1757_p7 = pnand %p1756_p6, %p1750_p3 }
  0x14   :  { %1760 = shalt.err (!%p1757_p7)
}
  0x15   :  { %s1951_s17 = smov 64   ;;  %s1952_s18 = smov 4  }
  0x16   :  { %42 = dma.hbm_to_vmem [thread:$0]  %s2281_s1, 1536, %s37_s28, [#allocation6], %s1951_s17, %s1951_s17, %s1952_s18  }
  0x17   :  { %s1761_s23 = scalar_lea.hbm %s2283_s3, 3072 }
  0x18   :  { %p1762_p8 = scmp.ne.s32.totalorder %s2283_s3, %s1761_s23  ;;  %p1765_p9 = scmp.lt.u32.totalorder %s1761_s23, %s2283_s3 }
  0x1a   :  { %p1767_p10 = pnand %p1765_p9, %p1762_p8 }
  0x1c   :  { %1770 = shalt.err (!%p1767_p10)
}
  0x1d   :  { %s1771_s29 = scalar_lea.vmem %s2011_s30, 3072  ;;  %p1776_p12 = scmp.lt.s32.totalorder %s2011_s30, %s2011_s30 }
  0x1e   :  { %p1772_p11 = scmp.ne.s32.totalorder %s2011_s30, %s1771_s29  ;;  %p1777_p13 = scmp.lt.s32.totalorder %s1771_s29, %s1771_s29 }
  0x20   :  { %p1778_p0 = por %p1777_p13, %p1776_p12 }
  0x22   :  { %p1779_p1 = pnand %p1778_p0, %p1772_p11 }
  0x24   :  { %1782 = shalt.err (!%p1779_p1)
}
  0x25   :  { %64 = dma.hbm_to_vmem [thread:$0]  %s2283_s3, 3072, %s2011_s30, [#allocation9], %s1951_s17, %s1951_s17, %s1952_s18  }
  0x26   :  { %s1953_s9 = smov [#allocation11]   ;;  %s1954_s11 = smov [#allocation2]  }
  0x27   :  { %s81_s10 = sshll.u32 %s1953_s9, 4  ;;  %s24_s12 = sshll.u32 %s1954_s11, 4  ;;  %s82_s10 = int_to_ptr.vmem [resolvable:$true] %s81_s10  ;;  %s2048_s12 = int_to_ptr.vmem [resolvable:$true] %s24_s12 }
  0x28   :  { %s1783_s15 = scalar_lea.hbm %s2285_s5, 16 }
  0x29   :  { %p1784_p2 = scmp.ne.s32.totalorder %s2285_s5, %s1783_s15  ;;  %p1787_p3 = scmp.lt.u32.totalorder %s1783_s15, %s2285_s5 }
  0x2b   :  { %p1789_p4 = pnand %p1787_p3, %p1784_p2 }
  0x2d   :  { %1792 = shalt.err (!%p1789_p4)
}
  0x2e   :  { %s1793_s3 = scalar_lea.vmem %s82_s10, 16  ;;  %s1797_s30 = scalar_lea.vmem %s82_s10, 32 }
  0x2f   :  { %p1794_p5 = scmp.ne.s32.totalorder %s82_s10, %s1793_s3  ;;  %p1798_p6 = scmp.lt.s32.totalorder %s82_s10, %s82_s10 }
  0x30   :  { %p1799_p7 = scmp.lt.s32.totalorder %s1797_s30, %s1793_s3 }
  0x32   :  { %p1800_p8 = por %p1799_p7, %p1798_p6 }
  0x34   :  { %p1801_p9 = pnand %p1800_p8, %p1794_p5 }
  0x36   :  { %1804 = shalt.err (!%p1801_p9)
}
  0x37   :  { %84 = dma.hbm_to_vmem [thread:$0]  %s2285_s5, 16, %s82_s10, [#allocation12]  }
  0x38   :  { %s1805_s26 = scalar_lea.hbm %s2280_s0, 384 }
  0x39   :  { %p1806_p10 = scmp.ne.s32.totalorder %s2280_s0, %s1805_s26  ;;  %p1809_p11 = scmp.lt.u32.totalorder %s1805_s26, %s2280_s0 }
  0x3b   :  { %p1811_p12 = pnand %p1809_p11, %p1806_p10 }
  0x3d   :  { %1814 = shalt.err (!%p1811_p12)
}
  0x3e   :  { %s1815_s9 = scalar_lea.vmem %s2048_s12, 384  ;;  %p1820_p0 = scmp.lt.s32.totalorder %s2048_s12, %s2048_s12 }
  0x3f   :  { %p1816_p13 = scmp.ne.s32.totalorder %s2048_s12, %s1815_s9  ;;  %p1821_p1 = scmp.lt.s32.totalorder %s1815_s9, %s1815_s9 }
  0x41   :  { %p1822_p2 = por %p1821_p1, %p1820_p0 }
  0x43   :  { %p1823_p3 = pnand %p1822_p2, %p1816_p13 }
  0x45   :  { %1826 = shalt.err (!%p1823_p3)
}
  0x46   :  { %30 = dma.hbm_to_vmem [thread:$0]  %s2280_s0, 384, %s2048_s12, [#allocation3], %s1951_s17, %s1951_s17, %s1952_s18  }
  0x47   :  { %s1955_s11 = smov [#allocation7]   ;;  %s1956_s14 = smov [#allocation10]  }
  0x48   :  { %s49_s13 = sshll.u32 %s1955_s11, 4  ;;  %s71_s15 = sshll.u32 %s1956_s14, 4  ;;  %s50_s13 = int_to_ptr.vmem [resolvable:$true] %s49_s13  ;;  %s72_s15 = int_to_ptr.vmem [resolvable:$true] %s71_s15 }
  0x49   :  { %s1827_s20 = scalar_lea.hbm %s2282_s2, 16 }
  0x4a   :  { %p1828_p4 = scmp.ne.s32.totalorder %s2282_s2, %s1827_s20  ;;  %p1831_p5 = scmp.lt.u32.totalorder %s1827_s20, %s2282_s2 }
  0x4c   :  { %p1833_p6 = pnand %p1831_p5, %p1828_p4 }
  0x4e   :  { %1836 = shalt.err (!%p1833_p6)
}
  0x4f   :  { %s1837_s0 = scalar_lea.vmem %s50_s13, 16  ;;  %s1841_s17 = scalar_lea.vmem %s50_s13, 32 }
  0x50   :  { %p1838_p7 = scmp.ne.s32.totalorder %s50_s13, %s1837_s0  ;;  %p1842_p8 = scmp.lt.s32.totalorder %s50_s13, %s50_s13 }
  0x51   :  { %p1843_p9 = scmp.lt.s32.totalorder %s1841_s17, %s1837_s0 }
  0x53   :  { %p1844_p10 = por %p1843_p9, %p1842_p8 }
  0x55   :  { %p1845_p11 = pnand %p1844_p10, %p1838_p7 }
  0x57   :  { %1848 = shalt.err (!%p1845_p11)
}
  0x58   :  { %52 = dma.hbm_to_vmem [thread:$0]  %s2282_s2, 16, %s50_s13, [#allocation6]  }
  0x59   :  { %s1849_s25 = scalar_lea.hbm %s2284_s4, 16 }
  0x5a   :  { %p1850_p12 = scmp.ne.s32.totalorder %s2284_s4, %s1849_s25  ;;  %p1853_p13 = scmp.lt.u32.totalorder %s1849_s25, %s2284_s4 }
  0x5c   :  { %p1855_p0 = pnand %p1853_p13, %p1850_p12 }
  0x5e   :  { %1858 = shalt.err (!%p1855_p0)
}
  0x5f   :  { %s1859_s28 = scalar_lea.vmem %s72_s15, 16  ;;  %s1863_s9 = scalar_lea.vmem %s72_s15, 32 }
  0x60   :  { %p1860_p1 = scmp.ne.s32.totalorder %s72_s15, %s1859_s28  ;;  %p1864_p2 = scmp.lt.s32.totalorder %s72_s15, %s72_s15 }
  0x61   :  { %p1865_p3 = scmp.lt.s32.totalorder %s1863_s9, %s1859_s28 }
  0x63   :  { %p1866_p4 = por %p1865_p3, %p1864_p2 }
  0x65   :  { %p1867_p5 = pnand %p1866_p4, %p1860_p1 }
  0x67   :  { %1870 = shalt.err (!%p1867_p5)
}
  0x68   :  { %74 = dma.hbm_to_vmem [thread:$0]  %s2284_s4, 16, %s72_s15, [#allocation9]  }
  0x69   :  { %s1957_s10 = smov [#allocation13]   ;;  %s1958_s13 = smov [#allocation14]  }
  0x6a   :  { %s91_s11 = sshll.u32 %s1957_s10, 4  ;;  %s100_s14 = sshll.u32 %s1958_s13, 4  ;;  %s92_s11 = int_to_ptr.vmem [resolvable:$true] %s91_s11  ;;  %s2106_s14 = int_to_ptr.vmem [resolvable:$true] %s100_s14 }
  0x6b   :  { %s1871_s20 = scalar_lea.hbm %s2286_s6, 16 }
  0x6c   :  { %p1872_p6 = scmp.ne.s32.totalorder %s2286_s6, %s1871_s20  ;;  %p1875_p7 = scmp.lt.u32.totalorder %s1871_s20, %s2286_s6 }
  0x6e   :  { %p1877_p8 = pnand %p1875_p7, %p1872_p6 }
  0x70   :  { %1880 = shalt.err (!%p1877_p8)
}
  0x71   :  { %s1881_s4 = scalar_lea.vmem %s92_s11, 16  ;;  %s1885_s15 = scalar_lea.vmem %s92_s11, 32 }
  0x72   :  { %p1882_p9 = scmp.ne.s32.totalorder %s92_s11, %s1881_s4  ;;  %p1886_p10 = scmp.lt.s32.totalorder %s92_s11, %s92_s11 }
  0x73   :  { %p1887_p11 = scmp.lt.s32.totalorder %s1885_s15, %s1881_s4 }
  0x75   :  { %p1888_p12 = por %p1887_p11, %p1886_p10 }
  0x77   :  { %p1889_p13 = pnand %p1888_p12, %p1882_p9 }
  0x79   :  { %1892 = shalt.err (!%p1889_p13)
}
  0x7a   :  { %94 = dma.hbm_to_vmem [thread:$0]  %s2286_s6, 16, %s92_s11, [#allocation12]  }
  0x7b   :  { %s1893_s23 = scalar_lea.hbm %s2287_s7, 2048 }
  0x7c   :  { %p1894_p0 = scmp.ne.s32.totalorder %s2287_s7, %s1893_s23  ;;  %p1897_p1 = scmp.lt.u32.totalorder %s1893_s23, %s2287_s7 }
  0x7e   :  { %p1899_p2 = pnand %p1897_p1, %p1894_p0 }
  0x80   :  { %1902 = shalt.err (!%p1899_p2)
}
  0x81   :  { %s1903_s29 = scalar_lea.vmem %s2106_s14, 2048  ;;  %p1908_p4 = scmp.lt.s32.totalorder %s2106_s14, %s2106_s14 }
  0x82   :  { %p1904_p3 = scmp.ne.s32.totalorder %s2106_s14, %s1903_s29  ;;  %p1909_p5 = scmp.lt.s32.totalorder %s1903_s29, %s1903_s29 }
  0x84   :  { %p1910_p6 = por %p1909_p5, %p1908_p4 }
  0x86   :  { %p1911_p7 = pnand %p1910_p6, %p1904_p3 }
  0x88   :  { %1914 = shalt.err (!%p1911_p7)
}
  0x89   :  { %s1959_s6 = smov 128   ;;  %s1960_s1 = smov 8  }
  0x8a   :  { %106 = dma.hbm_to_vmem [thread:$0]  %s2287_s7, 2048, %s2106_s14, [#allocation15], %s1959_s6, %s1959_s6, %s1960_s1  }
  0x8b   :  { %1937 = dma.done.wait [#allocation3], 384  }
  0x8c   :  { %1938 = vsyncadd [#allocation3], 4294966912 }
  0x8d   :  { %1939 = dma.done.wait [#allocation6], 1552  }
  0x8e   :  { %1940 = vsyncadd [#allocation6], 4294965744 }
  0x8f   :  { %1941 = dma.done.wait [#allocation9], 3088  }
  0x90   :  { %1942 = vsyncadd [#allocation9], 4294964208 }
  0x91   :  { %1943 = dma.done.wait [#allocation12], 32  }
  0x92   :  { %1944 = vsyncadd [#allocation12], 4294967264 }
  0x93   :  { %1945 = dma.done.wait [#allocation15], 2048  }
  0x94   :  { %1946 = vsyncadd [#allocation15], 4294965248  ;;  %v1699_v0 = vld [vmem:[#allocation5] sm:$0xff]   ;;  %v1700_v1 = vld [vmem:[#allocation5 + $0x8] sm:$0xff]   ;;  %vm236_vm0 = vcmask 523264   ;;  %vm383_vm1 = vcmask 1042432  }
  0x95   :  { %1430 = vmatprep.subr.bf16.mxu0 %v1699_v0  ;;  %v1701_v2 = vld [vmem:[#allocation5 + $0x10] sm:$0xff]   ;;  %v1703_v3 = vld [vmem:[#allocation5 + $0x20] sm:$0xff]   ;;  %v132_v4 = vld [vmem:[#allocation2] sm:$0xf]  ;;  %vm146_vm2 = vsmask.f32 3328 }
  0x96   :  { %1431 = vmatpush3.bf16.msra.mxu0 %v1699_v0  ;;  %v133_v5 = vld [vmem:[#allocation2 + $0x4] sm:$0xf]  ;;  %1418 = vmatprep.subr.bf16.mxu1 %v1703_v3  ;;  %v150_v6 = vshrl.u32 %v132_v4, 16  ;;  %vm147_vm3 = vsmask.f32 7440  ;;  %vm384_vm4 = vcmask 1046532  }
  0x97   :  { %1432 = vmatprep.subr.bf16.mxu0 %v1700_v1  ;;  %v1279_v7 = vcombine.low %v132_v4, %v133_v5  ;;  %v1702_v8 = vld [vmem:[#allocation5 + $0x18] sm:$0xff]   ;;  %1419 = vmatpush3.bf16.msra.mxu1 %v1703_v3  ;;  %v388_v9 = vrot.slane %v133_v5, 5  ;;  %v153_v10 = vshll.u32 %v132_v4, 16  ;;  %v163_v11 = vshrl.u32 %v133_v5, 16  ;;  %v1706_v13 = vld [vmem:[#allocation5 + $0x28] sm:$0xff]   ;;  %v1705_v18 = vld [vmem:[#allocation5 + $0x40] sm:$0xff]  }
  0x98   :  { %v1287_v12 = vrot.slane %v132_v4, 9  ;;  %v2141_v14 = vld [vmem:[#allocation2 + $0xc] sm:$0xf]  ;;  %v2143_v16 = vld [vmem:[#allocation2 + $0x10] sm:$0xf]  ;;  %v152_v17 = vrot.slane %v150_v6, 4  ;;  %1420 = vmatprep.subr.bf16.mxu1 %v1706_v13  ;;  %vm2151_vm5 = vmor %vm383_vm1, %vm384_vm4 }
  0x99   :  { %1438 = vmatprep.mubr.msk.bf16.mxu0 %vm236_vm0, %v1279_v7  ;;  %v390_v15 = vrot.slane %v388_v9, 4  ;;  %v174_v19 = vshrl.u32 %v2141_v14, 16  ;;  %v177_v20 = vshll.u32 %v2141_v14, 16  ;;  %v187_v21 = vshrl.u32 %v2143_v16, 16  ;;  %v1709_v22 = vld [vmem:[#allocation5 + $0x30] sm:$0xff]   ;;  %v1711_v27 = vld [vmem:[#allocation5 + $0x38] sm:$0xff]   ;;  %vm2159_vm6 = vmor %vm146_vm2, %vm147_vm3 }
  0x9a   :  { %1433 = vmatpush3.bf16.msra.mxu0 %v1700_v1  ;;  %v1288_v23 = vrot.slane %v2141_v14, 9  ;;  %v155_v24 = vrot.slane %v153_v10, 5  ;;  %v1280_v26 = vcombine.low %v2141_v14, %v2143_v16  ;;  %v134_v28 = vld [vmem:[#allocation2 + $0x8] sm:$0x1]  ;;  %v159_v29 = vshll.u32 %v133_v5, 16  ;;  %v1708_v37 = vld [vmem:[#allocation5 + $0x48] sm:$0xff]  }
  0x9b   :  { %1434 = vmatprep.subr.bf16.mxu0 %v1701_v2  ;;  %1421 = vmatpush3.bf16.msra.mxu1 %v1706_v13  ;;  %v165_v31 = vrot.slane %v163_v11, 4  ;;  %v169_v32 = vshll.u32 %v134_v28, 16  ;;  %v391_v33 = vrot.slane %v134_v28, 5  ;;  %v137_v35 = vld [vmem:[#allocation2 + $0x14] sm:$0x1]  ;;  %v176_v36 = vrot.slane %v174_v19, 4 }
  0x9c   :  { %1422 = vmatprep.subr.bf16.mxu1 %v1709_v22  ;;  %v156_v30 = vor.u32 %v155_v24, %v152_v17  ;;  %v161_v34 = vrot.slane %v159_v29, 5  ;;  %v179_v40 = vrot.slane %v177_v20, 5  ;;  %v183_v41 = vshll.u32 %v2143_v16, 16  ;;  %v1713_v47 = vld [vmem:[#allocation8 + $0x40] sm:$0xff]   ;;  %v1710_v52 = vld [vmem:[#allocation5 + $0x50] sm:$0xff]   ;;  %v1712_v62 = vld [vmem:[#allocation5 + $0x58] sm:$0xff]  }
  0x9d   :  { %v389_v42 = vsel %vm2151_vm5, %v1287_v12, %v388_v9  ;;  %v171_v44 = vrot.slane %v169_v32, 5  ;;  %v189_v45 = vrot.slane %v187_v21, 4  ;;  %v193_v46 = vshll.u32 %v137_v35, 16  ;;  %v1715_v7 = vld [vmem:[#allocation8 + $0x50] sm:$0xff]   ;;  %v1716_v9 = vld [vmem:[#allocation8 + $0x58] sm:$0xff]   ;;  %v1717_v10 = vld [vmem:[#allocation8 + $0x60] sm:$0xff]  }
  0x9e   :  { %1435 = vmatpush3.bf16.msra.mxu0 %v1701_v2  ;;  %v157_v39 = vrot.slane %v156_v30, 4  ;;  %v166_v43 = vor.u32 %v165_v31, %v161_v34  ;;  %v395_v48 = vrot.slane %v2143_v16, 5  ;;  %v180_v49 = vor.u32 %v179_v40, %v176_v36  ;;  %v1714_v2 = vld [vmem:[#allocation8 + $0x48] sm:$0xff]   ;;  %v1719_v12 = vld [vmem:[#allocation8 + $0x70] sm:$0xff]   ;;  %v1720_v13 = vld [vmem:[#allocation8 + $0x78] sm:$0xff]   ;;  %s1965_s7 = smov [#allocation16]  }
  0x9f   :  { %1436 = vmatprep.subr.bf16.mxu0 %v1702_v8  ;;  %1423 = vmatpush3.bf16.msra.mxu1 %v1709_v22  ;;  %v185_v50 = vrot.slane %v183_v41, 5  ;;  %v392_v51 = vsel %vm2151_vm5, %v390_v15, %v391_v33  ;;  %v398_v55 = vrot.slane %v137_v35, 5  ;;  %v195_v59 = vrot.slane %v193_v46, 5  ;;  %v1718_v11 = vld [vmem:[#allocation8 + $0x68] sm:$0xff]   ;;  %v1721_v14 = vld [vmem:[#allocation8] sm:$0xff]   ;;  %v1724_v46 = vld [vmem:[#allocation8 + $0x18] sm:$0xff]  }
  0xa0   :  { %1424 = vmatprep.subr.bf16.mxu1 %v1711_v27  ;;  %v162_v53 = vsel %vm2159_vm6, %v157_v39, %v161_v34  ;;  %v167_v54 = vrot.slane %v166_v43, 4  ;;  %v1289_v56 = vcombine.low %v389_v42, %v392_v51  ;;  %v181_v57 = vrot.slane %v180_v49, 4  ;;  %v1297_v20 = vld [vmem:[#allocation7] ss:$0 sm:$0xff]  ;;  %v1722_v38 = vld [vmem:[#allocation8 + $0x8] sm:$0xff]   ;;  %v1723_v43 = vld [vmem:[#allocation8 + $0x10] sm:$0xff]  }
  0xa1   :  { %v190_v58 = vor.u32 %v189_v45, %v185_v50  ;;  %v397_v1 = vrot.slane %v395_v48, 4  ;;  %v396_v5 = vsel %vm2151_vm5, %v1288_v23, %v395_v48  ;;  %vm531_vm7 = vcmask 1040384   ;;  %v1726_v48 = vld [vmem:[#allocation8 + $0x28] sm:$0xff]   ;;  %v1727_v49 = vld [vmem:[#allocation8 + $0x30] sm:$0xff]   ;;  %v1728_v51 = vld [vmem:[#allocation8 + $0x38] sm:$0xff]   ;;  %s1255_s2 = sshll.u32 %s1965_s7, 4  ;;  %s1256_s2 = int_to_ptr.vmem [resolvable:$true] %s1255_s2 }
  0xa2   :  { %1437 = vmatpush3.bf16.msra.mxu0 %v1702_v8  ;;  %v172_v60 = vsel %vm2159_vm6, %v167_v54, %v171_v44  ;;  %v186_v63 = vsel %vm2159_vm6, %v181_v57, %v185_v50  ;;  %vm532_vm8 = vsmask.f32 256  ;;  %vm542_vm10 = vcmask 1047552   ;;  %v917_v42 = vld [vmem:[#allocation14 + $0x70] sm:$0xff]  ;;  %s1915_s5 = scalar_lea.vmem %s1256_s2, 512  ;;  %p1920_p9 = scmp.lt.s32.totalorder %s1256_s2, %s1256_s2 }
  0xa3   :  { %1442 = vmatprep.subr.bf16.mxu0 %v1705_v18  ;;  %1425 = vmatpush3.bf16.msra.mxu1 %v1711_v27  ;;  %v1271_v61 = vcombine.low %v162_v53, %v172_v60  ;;  %v191_v0 = vrot.slane %v190_v58, 4  ;;  %v399_v6 = vsel %vm2151_vm5, %v397_v1, %v398_v55  ;;  %vm2191_vm9 = vmand %vm531_vm7, %vm532_vm8  ;;  %v1729_v55 = vld [vmem:[#allocation8 + $0x80] sm:$0xff]   ;;  %vm543_vm11 = vsmask.f32 7424  ;;  %v1734_v1 = vld [vmem:[#allocation8 + $0xa8] sm:$0xff]   ;;  %p1916_p8 = scmp.ne.s32.totalorder %s1256_s2, %s1915_s5  ;;  %p1921_p10 = scmp.lt.s32.totalorder %s1915_s5, %s1915_s5 }
  0xa4   :  { %1454 = vmatprep.subr.bf16.mxu1 %v1713_v47  ;;  %v1290_v8 = vcombine.low %v396_v5, %v399_v6  ;;  %vm2199_vm12 = vmand %vm542_vm10, %vm543_vm11  ;;  %vm1962_vm13 = vmmov 0   ;;  %vm919_vm14 = vcmask 261120  }
  0xa5   :  { %1439 = vmatmul.mubr.msk.bf16.vlgmr.msra.gmra.mrb[0].mxu0 %vm236_vm0, %v1280_v26  ;;  %1426 = vmatprep.mubr.msk.bf16.mxu1 %vm236_vm0, %v1271_v61  ;;  %v196_v3 = vsel %vm2159_vm6, %v191_v0, %v195_v59  ;;  %v1730_v59 = vld [vmem:[#allocation8 + $0x88] sm:$0xff]   ;;  %v1733_v0 = vld [vmem:[#allocation8 + $0xa0] sm:$0xff]   ;;  %p1922_p11 = por %p1921_p10, %p1920_p9 }
  0xa6   :  { %1443 = vmatpush3.bf16.msra.mxu0 %v1705_v18  ;;  %1450 = vmatprep.mubr.msk.bf16.mxu0 %vm236_vm0, %v1289_v56  ;;  %v1272_v4 = vcombine.low %v186_v63, %v196_v3  ;;  %v1732_v63 = vld [vmem:[#allocation8 + $0x98] sm:$0xff]  }
  0xa7   :  { %1444 = vmatprep.subr.bf16.mxu0 %v1708_v37  ;;  %v1736_v3 = vld [vmem:[#allocation8 + $0xb8] sm:$0xff]   ;;  %p1923_p12 = pnand %p1922_p11, %p1916_p8 }
  0xa8   :  { %1427 = vmatmul.mubr.msk.bf16.vlgmr.msra.gmra.mrb[0].mxu1 %vm236_vm0, %v1272_v4 }
  0xa9   :  { %1455 = vmatpush3.bf16.msra.mxu1 %v1713_v47  ;;  %v1725_v47 = vld [vmem:[#allocation8 + $0x20] sm:$0xff]  }
  0xaa   :  { %1445 = vmatpush3.bf16.msra.mxu0 %v1708_v37  ;;  %1456 = vmatprep.subr.bf16.mxu1 %v1714_v2 }
  0xab   :  { %1446 = vmatprep.subr.bf16.mxu0 %v1710_v52 }
  0xad   :  { %1457 = vmatpush3.bf16.msra.mxu1 %v1714_v2  ;;  %v1735_v2 = vld [vmem:[#allocation8 + $0xb0] sm:$0xff]  }
  0xae   :  { %1447 = vmatpush3.bf16.msra.mxu0 %v1710_v52  ;;  %1458 = vmatprep.subr.bf16.mxu1 %v1715_v7 }
  0xaf   :  { %1448 = vmatprep.subr.bf16.mxu0 %v1712_v62 }
  0xb1   :  { %1459 = vmatpush3.bf16.msra.mxu1 %v1715_v7  ;;  %v1961_v7 = vmov 0.0|0.0  }
  0xb2   :  { %1449 = vmatpush3.bf16.msra.mxu0 %v1712_v62  ;;  %1460 = vmatprep.subr.bf16.mxu1 %v1716_v9  ;;  %v1731_v62 = vld [vmem:[#allocation8 + $0x90] sm:$0xff]  }
  0xb3   :  { %1606 = vmatprep.subr.bf16.mxu0 %v1961_v7 }
  0xb5   :  { %1451 = vmatmul.mubr.msk.bf16.vlgmr.msra.gmra.mrb[0].mxu0 %vm236_vm0, %v1290_v8  ;;  %1461 = vmatpush3.bf16.msra.mxu1 %v1716_v9  ;;  %v1963_v8 = vmov 0.0  }
  0xb6   :  { %1462 = vmatprep.subr.bf16.mxu1 %v1717_v10  ;;  %1522 = vmatprep.mubr.msk.f32.mxu0 %vm1962_vm13, %v1963_v8 }
  0xb9   :  { %1463 = vmatpush3.bf16.msra.mxu1 %v1717_v10  ;;  %v1322_v10 = vld [vmem:[#allocation10] ss:$0 sm:$0xff] }
  0xba   :  { %1464 = vmatprep.subr.bf16.mxu1 %v1718_v11 }
  0xbd   :  { %1465 = vmatpush3.bf16.msra.mxu1 %v1718_v11 }
  0xbe   :  { %1466 = vmatprep.subr.bf16.mxu1 %v1719_v12 }
  0xc1   :  { %1467 = vmatpush3.bf16.msra.mxu1 %v1719_v12 }
  0xc2   :  { %1468 = vmatprep.subr.bf16.mxu1 %v1720_v13 }
  0xc5   :  { %1469 = vmatpush3.bf16.msra.mxu1 %v1720_v13 }
  0xc6   :  { %1474 = vmatprep.subr.bf16.mxu1 %v1721_v14 }
 0x17b   :  { %v1428_v15 = vpop.f32.mrb[0].mxu1 }
 0x17c   :  { %v277_v16 = vpop.f32.mrb[1].mxu1 }
 0x17d   :  { %v1429_v17 = vpop.f32.mrb[2].mxu1 }
 0x17e   :  { %v280_v18 = vpop.f32.mrb[3].mxu1 }
 0x188   :  { %v1452_v19 = vpop.f32.mrb[0].mxu0 }
 0x189   :  { %v1666_v21 = vadd.f32 %v1452_v19, %v1428_v15  ;;  %v479_v22 = vpop.f32.mrb[1].mxu0  ;;  %v903_v19 = vld [vmem:[#allocation14] sm:$0xff] }
 0x18a   :  { %v1667_v23 = vadd.f32 %v479_v22, %v277_v16  ;;  %v1453_v24 = vpop.f32.mrb[2].mxu0 }
 0x18b   :  { %v507_v25 = vadd.f32 %v1666_v21, %v1297_v20  ;;  %v1668_v26 = vadd.f32 %v1453_v24, %v1429_v17  ;;  %v482_v27 = vpop.f32.mrb[3].mxu0  ;;  %v906_v24 = vld [vmem:[#allocation14 + $0x18] sm:$0xff] }
 0x18c   :  { %v505_v28 = vadd.f32 %v1667_v23, %v1297_v20  ;;  %v1669_v29 = vadd.f32 %v482_v27, %v280_v18  ;;  %v905_v23 = vld [vmem:[#allocation14 + $0x10] sm:$0xff]  ;;  %v907_v27 = vld [vmem:[#allocation14 + $0x20] sm:$0xff] }
 0x18d   :  { %v508_v30 = vadd.f32 %v1668_v26, %v1297_v20  ;;  %v511_v32 = vmax.f32 %v507_v25, 0.0  ;;  %v1964_v25 = vmov 1.0   ;;  %v2231_v26 = vpack.c.bf16 %v906_v24, %v905_v23 }
 0x18e   :  { %v506_v31 = vadd.f32 %v1669_v29, %v1297_v20  ;;  %v509_v34 = vmax.f32 %v505_v28, 0.0  ;;  %v904_v20 = vld [vmem:[#allocation14 + $0x8] sm:$0xff] }
 0x18f   :  { %v512_v33 = vmax.f32 %v508_v30, 0.0  ;;  %v2225_v22 = vpack.c.bf16 %v904_v20, %v903_v19  ;;  %v908_v28 = vld [vmem:[#allocation14 + $0x28] sm:$0xff]  ;;  %v909_v30 = vld [vmem:[#allocation14 + $0x30] sm:$0xff] }
 0x190   :  { %v510_v35 = vmax.f32 %v506_v31, 0.0  ;;  %v1619_v29 = vpack.c.bf16 %v908_v28, %v907_v27  ;;  %v910_v31 = vld [vmem:[#allocation14 + $0x38] sm:$0xff] }
 0x191   :  { %v2188_v36 = vpack.c.bf16 %v512_v33, %v511_v32  ;;  %v1622_v32 = vpack.c.bf16 %v910_v31, %v909_v30  ;;  %v911_v33 = vld [vmem:[#allocation14 + $0x40] sm:$0xff] }
 0x192   :  { %v513_v37 = vpack.c.bf16 %v510_v35, %v509_v34  ;;  %v912_v34 = vld [vmem:[#allocation14 + $0x48] sm:$0xff] }
 0x193   :  { %v523_v50 = vshrl.u32 %v2188_v36, 16  ;;  %v526_v54 = vshll.u32 %v2188_v36, 16  ;;  %v1625_v35 = vpack.c.bf16 %v912_v34, %v911_v33 }
 0x194   :  { %1470 = vmatprep.mubr.bf16.mxu1 %v513_v37  ;;  %v516_v39 = vshrl.u32 %v513_v37, 16  ;;  %v519_v41 = vshll.u32 %v513_v37, 16  ;;  %v914_v37 = vld [vmem:[#allocation14 + $0x58] sm:$0xff] }
 0x195   :  { %1471 = vmatmul.mubr.bf16.vlgmr.msra.gmra.mrb[4].mxu1 %v2188_v36  ;;  %v525_v52 = vrot.slane %v523_v50, 7  ;;  %v538_v4 = vrot.slane %v526_v54, 1  ;;  %v913_v36 = vld [vmem:[#allocation14 + $0x50] sm:$0xff] }
 0x196   :  { %1475 = vmatpush3.bf16.msra.mxu1 %v1721_v14  ;;  %v518_v40 = vrot.slane %v516_v39, 7  ;;  %v536_v53 = vrot.slane %v519_v41, 1 }
 0x197   :  { %1476 = vmatprep.subr.bf16.mxu1 %v1722_v38  ;;  %v528_v56 = vor.u32 %v526_v54, %v525_v52  ;;  %v539_v5 = vor.u32 %v538_v4, %v523_v50 }
 0x198   :  { %v521_v44 = vor.u32 %v519_v41, %v518_v40  ;;  %v537_v57 = vor.u32 %v536_v53, %v516_v39  ;;  %v915_v39 = vld [vmem:[#allocation14 + $0x60] sm:$0xff]  ;;  %v916_v40 = vld [vmem:[#allocation14 + $0x68] sm:$0xff] }
 0x199   :  { %v535_v60 = vsel %vm2191_vm9, 0, %v528_v56  ;;  %v546_v6 = vsel %vm2199_vm12, %v539_v5, 0  ;;  %v1631_v41 = vpack.c.bf16 %v916_v40, %v915_v39 }
 0x19a   :  { %1477 = vmatpush3.bf16.msra.mxu1 %v1722_v38  ;;  %v534_v45 = vsel %vm2191_vm9, 0, %v521_v44  ;;  %v545_v61 = vsel %vm2199_vm12, %v537_v57, 0  ;;  %v1628_v38 = vpack.c.bf16 %v914_v37, %v913_v36 }
 0x19b   :  { %1490 = vmatprep.mubr.bf16.mxu1 %v534_v45  ;;  %1478 = vmatprep.subr.bf16.mxu1 %v1723_v43 }
 0x19e   :  { %1479 = vmatpush3.bf16.msra.mxu1 %v1723_v43  ;;  %v918_v43 = vld [vmem:[#allocation14 + $0x78] sm:$0xff] }
 0x19f   :  { %1480 = vmatprep.subr.bf16.mxu1 %v1724_v46  ;;  %v1634_v44 = vpack.c.bf16 %v918_v43, %v917_v42 }
 0x1a2   :  { %1481 = vmatpush3.bf16.msra.mxu1 %v1724_v46 }
 0x1a3   :  { %1482 = vmatprep.subr.bf16.mxu1 %v1725_v47 }
 0x1a6   :  { %1483 = vmatpush3.bf16.msra.mxu1 %v1725_v47  ;;  %v1064_v47 = vlaneseq }
 0x1a7   :  { %1484 = vmatprep.subr.bf16.mxu1 %v1726_v48 }
 0x1aa   :  { %1485 = vmatpush3.bf16.msra.mxu1 %v1726_v48  ;;  %v1065_v48 = vshrl.u32 %v1064_v47, 7 }
 0x1ab   :  { %1486 = vmatprep.subr.bf16.mxu1 %v1727_v49 }
 0x1ae   :  { %1487 = vmatpush3.bf16.msra.mxu1 %v1727_v49  ;;  %v1066_v49 = vsub.s32 0, %v1065_v48 }
 0x1af   :  { %1488 = vmatprep.subr.bf16.mxu1 %v1728_v51 }
 0x1b2   :  { %1489 = vmatpush3.bf16.msra.mxu1 %v1728_v51 }
 0x1b3   :  { %1494 = vmatprep.subr.bf16.mxu1 %v1729_v55 }
 0x1b5   :  { %1491 = vmatmul.mubr.bf16.vlgmr.msra.gmra.mrb[4].mxu1 %v535_v60 }
 0x1b6   :  { %1495 = vmatpush3.bf16.msra.mxu1 %v1729_v55  ;;  %1510 = vmatprep.mubr.bf16.mxu1 %v545_v61 }
 0x1b7   :  { %1496 = vmatprep.subr.bf16.mxu1 %v1730_v59 }
 0x1ba   :  { %1497 = vmatpush3.bf16.msra.mxu1 %v1730_v59 }
 0x1bb   :  { %1498 = vmatprep.subr.bf16.mxu1 %v1731_v62 }
 0x1be   :  { %1499 = vmatpush3.bf16.msra.mxu1 %v1731_v62 }
 0x1bf   :  { %1500 = vmatprep.subr.bf16.mxu1 %v1732_v63 }
 0x1c2   :  { %1501 = vmatpush3.bf16.msra.mxu1 %v1732_v63 }
 0x1c3   :  { %1502 = vmatprep.subr.bf16.mxu1 %v1733_v0 }
 0x1c6   :  { %1503 = vmatpush3.bf16.msra.mxu1 %v1733_v0 }
 0x1c7   :  { %1504 = vmatprep.subr.bf16.mxu1 %v1734_v1 }
 0x1ca   :  { %1505 = vmatpush3.bf16.msra.mxu1 %v1734_v1 }
 0x1cb   :  { %1506 = vmatprep.subr.bf16.mxu1 %v1735_v2 }
 0x1ce   :  { %1507 = vmatpush3.bf16.msra.mxu1 %v1735_v2 }
 0x1cf   :  { %1508 = vmatprep.subr.bf16.mxu1 %v1736_v3 }
 0x1d2   :  { %1509 = vmatpush3.bf16.msra.mxu1 %v1736_v3 }
 0x1d5   :  { %1511 = vmatmul.mubr.bf16.vlgmr.msra.gmra.mrb[4].mxu1 %v546_v6  ;;  %v1217_v6 = vld [vmem:[#allocation11] sm:$0x1] }
 0x2a8   :  { %v1512_v9 = vpop.f32.mrb[4].mxu1 }
 0x2a9   :  { %v873_v11 = vpop.f32.mrb[5].mxu1  ;;  %v2220_v18 = vadd.f32 %v1512_v9, %v1322_v10 }
 0x2aa   :  { %v1513_v12 = vpop.f32.mrb[6].mxu1  ;;  %v2212_v14 = vadd.f32 %v1322_v10, %v873_v11  ;;  %v1325_v11 = vld [vmem:[#allocation13] ss:$0 sm:$0xff] }
 0x2ab   :  { %v876_v13 = vpop.f32.mrb[7].mxu1  ;;  %v2216_v16 = vadd.f32 %v1513_v12, %v1322_v10 }
 0x2ac   :  { %v2214_v15 = vadd.f32 %v1322_v10, %v876_v13 }
 0x2ad   :  { %v1610_v21 = vpack.c.bf16 %v2216_v16, %v2220_v18 }
 0x2ae   :  { %v1607_v17 = vpack.c.bf16 %v2214_v15, %v2212_v14 }
 0x2b0   :  { %1608 = vmatpush3.bf16.msra.mxu0 %v1607_v17 }
 0x2b1   :  { %1609 = vmatprep.subr.bf16.mxu0 %v1961_v7 }
 0x2b4   :  { %1611 = vmatpush3.bf16.msra.mxu0 %v1610_v21 }
 0x2b5   :  { %1612 = vmatprep.subr.bf16.mxu0 %v1961_v7 }
 0x2b7   :  { %1523 = vmatmul.mubr.msk.f32.vlgmr.msra.gmra.mrb[4].mxu0 %vm919_vm14, %v1964_v25 }
 0x2b8   :  { %1614 = vmatpush3.bf16.msra.mxu0 %v2225_v22  ;;  %1557 = vmatprep.mubr.msk.f32.mxu0 %vm1962_vm13, %v1963_v8 }
 0x2b9   :  { %1615 = vmatprep.subr.bf16.mxu0 %v1961_v7 }
 0x2bc   :  { %1617 = vmatpush3.bf16.msra.mxu0 %v2231_v26 }
 0x2bd   :  { %1618 = vmatprep.subr.bf16.mxu0 %v1961_v7 }
 0x2c0   :  { %1620 = vmatpush3.bf16.msra.mxu0 %v1619_v29 }
 0x2c1   :  { %1621 = vmatprep.subr.bf16.mxu0 %v1961_v7 }
 0x2c4   :  { %1623 = vmatpush3.bf16.msra.mxu0 %v1622_v32 }
 0x2c5   :  { %1624 = vmatprep.subr.bf16.mxu0 %v1961_v7 }
 0x2c8   :  { %1626 = vmatpush3.bf16.msra.mxu0 %v1625_v35 }
 0x2c9   :  { %1627 = vmatprep.subr.bf16.mxu0 %v1961_v7 }
 0x2cc   :  { %1629 = vmatpush3.bf16.msra.mxu0 %v1628_v38 }
 0x2cd   :  { %1630 = vmatprep.subr.bf16.mxu0 %v1961_v7 }
 0x2d0   :  { %1632 = vmatpush3.bf16.msra.mxu0 %v1631_v41 }
 0x2d1   :  { %1633 = vmatprep.subr.bf16.mxu0 %v1961_v7 }
 0x2d4   :  { %1635 = vmatpush3.bf16.msra.mxu0 %v1634_v44 }
 0x2d5   :  { %1636 = vmatprep.subr.bf16.mxu0 %v1961_v7 }
 0x38a   :  { %v989_v45 = vpop.f32.mrb[4].mxu0 }
 0x38b   :  { %v1524_v46 = vpop.f32.mrb[5].mxu0  ;;  %1558 = vmatmul.mubr.f32.vlgmr.msra.gmra.mrb[6].mxu0 %v989_v45 }
 0x38c   :  { %1568 = vmatprep.mubr.msk.f32.mxu0 %vm1962_vm13, %v1963_v8 }
 0x45e   :  { %v1059_v50 = vpop.f32.mrb[6].mxu0 }
 0x45f   :  { %v1063_v51 = vmul.f32 0.001953125, %v1059_v50  ;;  %v1559_v52 = vpop.f32.mrb[7].mxu0 }
 0x461   :  { %v1067_v53 = vrot.slane %v1063_v51, %v1066_v49 }
 0x463   :  { %v1068_v54 = vsub.f32 %v2212_v14, %v1067_v53  ;;  %v1069_v55 = vsub.f32 %v2214_v15, %v1067_v53  ;;  %v1070_v56 = vsub.f32 %v2220_v18, %v1067_v53  ;;  %v1071_v57 = vsub.f32 %v2216_v16, %v1067_v53 }
 0x465   :  { %v1072_v58 = vmul.f32 %v1068_v54, %v1068_v54  ;;  %v1073_v59 = vmul.f32 %v1069_v55, %v1069_v55  ;;  %v1074_v61 = vmul.f32 %v1070_v56, %v1070_v56  ;;  %v1075_v62 = vmul.f32 %v1071_v57, %v1071_v57 }
 0x467   :  { %v1637_v60 = vpack.c.bf16 %v1073_v59, %v1072_v58  ;;  %v1640_v63 = vpack.c.bf16 %v1075_v62, %v1074_v61 }
 0x469   :  { %1638 = vmatpush3.bf16.msra.mxu0 %v1637_v60 }
 0x46a   :  { %1639 = vmatprep.subr.bf16.mxu0 %v1961_v7 }
 0x46d   :  { %1641 = vmatpush3.bf16.msra.mxu0 %v1640_v63 }
 0x46e   :  { %1642 = vmatprep.subr.bf16.mxu0 %v1961_v7 }
 0x470   :  { %1569 = vmatmul.mubr.msk.f32.vlgmr.msra.gmra.mrb[8].mxu0 %vm919_vm14, %v1964_v25 }
 0x471   :  { %1644 = vmatpush3.bf16.msra.mxu0 %v2225_v22  ;;  %1603 = vmatprep.mubr.msk.f32.mxu0 %vm1962_vm13, %v1963_v8 }
 0x472   :  { %1645 = vmatprep.subr.bf16.mxu0 %v1961_v7 }
 0x475   :  { %1647 = vmatpush3.bf16.msra.mxu0 %v2231_v26 }
 0x476   :  { %1648 = vmatprep.subr.bf16.mxu0 %v1961_v7 }
 0x479   :  { %1650 = vmatpush3.bf16.msra.mxu0 %v1619_v29 }
 0x47a   :  { %1651 = vmatprep.subr.bf16.mxu0 %v1961_v7 }
 0x47d   :  { %1653 = vmatpush3.bf16.msra.mxu0 %v1622_v32 }
 0x47e   :  { %1654 = vmatprep.subr.bf16.mxu0 %v1961_v7 }
 0x481   :  { %1656 = vmatpush3.bf16.msra.mxu0 %v1625_v35 }
 0x482   :  { %1657 = vmatprep.subr.bf16.mxu0 %v1961_v7 }
 0x485   :  { %1659 = vmatpush3.bf16.msra.mxu0 %v1628_v38 }
 0x486   :  { %1660 = vmatprep.subr.bf16.mxu0 %v1961_v7 }
 0x489   :  { %1662 = vmatpush3.bf16.msra.mxu0 %v1631_v41 }
 0x48a   :  { %1663 = vmatprep.subr.bf16.mxu0 %v1961_v7 }
 0x48d   :  { %1665 = vmatpush3.bf16.msra.mxu0 %v1634_v44 }
 0x543   :  { %v1142_v0 = vpop.f32.mrb[8].mxu0 }
 0x544   :  { %v1570_v1 = vpop.f32.mrb[9].mxu0  ;;  %1604 = vmatmul.mubr.f32.vlgmr.msra.gmra.mrb[10].mxu0 %v1142_v0 }
 0x617   :  { %v1212_v2 = vpop.f32.mrb[10].mxu0 }
 0x618   :  { %v1216_v3 = vmul.f32 0.001953125, %v1212_v2  ;;  %v1605_v4 = vpop.f32.mrb[11].mxu0 }
 0x61a   :  { %v1218_v5 = vadd.f32 1e-05, %v1216_v3 }
 0x61c   :  { %1737 = vrsqrt.f32 %v1218_v5 }
 0x626   :  { %v1738_v8 = vpop.eup %1737 }
 0x627   :  { %v1220_v9 = vmul.f32 %v1738_v8, %v1217_v6 }
 0x629   :  { %v1225_v10 = vrot.slane %v1220_v9, %v1066_v49 }
 0x62b   :  { %v1227_v12 = vmul.f32 %v1225_v10, %v1068_v54  ;;  %v1228_v13 = vmul.f32 %v1225_v10, %v1069_v55  ;;  %v1229_v14 = vmul.f32 %v1225_v10, %v1070_v56  ;;  %v1230_v15 = vmul.f32 %v1225_v10, %v1071_v57 }
 0x62d   :  { %v1238_v7 = vadd.f32 %v1325_v11, %v1227_v12  ;;  %v1239_v16 = vadd.f32 %v1325_v11, %v1228_v13  ;;  %v1240_v17 = vadd.f32 %v1325_v11, %v1229_v14  ;;  %v1241_v18 = vadd.f32 %v1325_v11, %v1230_v15 }
 0x62f   :  { %v1242_v19 = vmax.f32 %v1238_v7, 0.0  ;;  %v1243_v20 = vmax.f32 %v1239_v16, 0.0  ;;  %v1244_v21 = vmax.f32 %v1240_v17, 0.0  ;;  %v1245_v22 = vmax.f32 %v1241_v18, 0.0 }
 0x631   :  { %1246 = vst [vmem:[#allocation16] sm:$0xff] %v1242_v19  ;;  %1247 = vst [vmem:[#allocation16 + $0x8] sm:$0xff] %v1243_v20 }
 0x632   :  { %1248 = vst [vmem:[#allocation16 + $0x10] sm:$0xff] %v1244_v21  ;;  %1249 = vst [vmem:[#allocation16 + $0x18] sm:$0xff] %v1245_v22 }
 0x633   :  { %1926 = shalt.err (!%p1923_p12)
}
 0x634   :  { %s1927_s13 = scalar_lea.hbm %s2288_s8, 512 }
 0x635   :  { %p1928_p13 = scmp.ne.s32.totalorder %s2288_s8, %s1927_s13  ;;  %p1931_p0 = scmp.lt.u32.totalorder %s1927_s13, %s2288_s8 }
 0x637   :  { %p1933_p1 = pnand %p1931_p0, %p1928_p13 }
 0x639   :  { %1936 = shalt.err (!%p1933_p1)
}
 0x63a   :  { %1261 = dma.vmem_to_hbm [thread:$0]  %s1256_s2, 512, %s2288_s8, [#allocation4], %s1959_s6, %s1959_s6, %s1960_s1  }
 0x63b   :  { %1947 = dma.done.wait [#allocation4], 512  }
 0x63c   :  { %1948 = vsyncadd [#allocation4], 4294966784 }
 0x63d   :  { %1265 = vsyncpa [#allocation3], 1 }
 0x63e   :  { %1266 = vsyncpa [#allocation6], 1 }
 0x63f   :  { %1267 = vsyncpa [#allocation9], 1 }
 0x640   :  { %1268 = vsyncpa [#allocation12], 1 }
 0x641   :  { %1269 = vsyncpa [#allocation15], 1 }
 0x642   :  { %1270 = vsyncpa [#allocation4], 1 }

</bundles_post_ra>
